<compile_context>
chip_gen: v7x
topology: tpu7x:2x2x1
jax: 0.10.0
libtpu: 0.0.40
codegen_flags: <defaults>
</compile_context>

<pallas_src>
import math

import jax
import jax.numpy as jnp
from jax import lax
from jax.experimental import pallas as pl
from jax.experimental.pallas import tpu as pltpu

EPS = 1e-05
LOG_2PI = math.log(2.0 * math.pi)

# f32 accumulation + explicit highest precision so the MXU matmuls hold the
# 1e-4 tolerance (TPU default precision can silently drop to bf16 passes).
_MM = dict(preferred_element_type=jnp.float32, precision=lax.Precision.HIGHEST)


def _gmm_posterior_kernel(means_ref, prec_ref, eps_ref, idx_ref,
                          samp_ref, logp_ref):
    f32 = jnp.float32
    means = means_ref[...].astype(f32)                 # (tb, m, z)
    p = prec_ref[...].astype(f32) + EPS                # (tb, m, z)
    eps = eps_ref[...].astype(f32)                     # (tb, s, z)
    idx = idx_ref[...]                                 # (tb, s, 1) int32

    tb, m, z = means.shape
    s = eps.shape[1]

    # std via rsqrt: no divide, no separate sqrt chain (EUP).
    std = lax.rsqrt(p)                                 # (tb, m, z)

    # One-hot selection built in-kernel from indices (cheap VPU filler); the
    # actual mean/std selection is a batched MXU contraction over m.
    ohc = (lax.broadcasted_iota(jnp.int32, (tb, s, m), 2) == idx).astype(f32)
    sel_mean = jnp.einsum('bsm,bmz->bsz', ohc, means, **_MM)     # (tb, s, z)
    sel_std = jnp.einsum('bsm,bmz->bsz', ohc, std, **_MM)        # (tb, s, z)
    samples = sel_mean + sel_std * eps                           # (tb, s, z)
    samp_ref[...] = samples.astype(samp_ref.dtype)

    # quad[b,m,s] = sum_z (x - mu)^2 p
    #            = sum_z x^2 p - 2 sum_z x (mu p) + sum_z mu^2 p
    # as two K=z MXU matmuls + a per-component bias (no (tb,s,m,z) slab).
    # TODO(synk): when z is a multiple of 128 these two matmuls can be fused
    # into one K=2z dot by concatenating [p ; mu*p] / [x^2 ; -2x] along z.
    mp = means * p                                               # (tb, m, z)
    quad = (jnp.einsum('bmz,bsz->bms', p, samples * samples, **_MM)
            - 2.0 * jnp.einsum('bmz,bsz->bms', mp, samples, **_MM)
            + jnp.sum(mp * means, axis=-1, keepdims=True))       # (tb, m, s)

    # log N(x; mu, 1/p) = -0.5 quad + 0.5 sum_z log p - 0.5 z log 2pi,
    # equal mixture weights 1/m folded into the constant.
    logdet = jnp.sum(jnp.log(p), axis=-1, keepdims=True)         # (tb, m, 1)
    lp = (-0.5 * quad + 0.5 * logdet
          - (0.5 * z * LOG_2PI + math.log(float(m))))            # (tb, m, s)

    # Stable logsumexp over the component (sublane) axis; s stays lane-dense
    # and the result lands directly in the (tb, 1, s) output block.
    mx = jnp.max(lp, axis=1, keepdims=True)                      # (tb, 1, s)
    lse = mx + jnp.log(jnp.sum(jnp.exp(lp - mx), axis=1, keepdims=True))
    logp_ref[...] = lse.astype(logp_ref.dtype)                   # (tb, 1, s)


def _vmem_limit_bytes():
    """Generation-aware VMEM limit: ~3/4 of physical, capped at 96 MiB."""
    cap = 64 * 1024 * 1024                      # conservative (v7x per-TC)
    try:
        info = pltpu.get_tpu_info()
        cap = int(getattr(info, "vmem_capacity_bytes", cap)) or cap
    except Exception:
        pass
    return int(min(cap * 3 // 4, 96 * 1024 * 1024))


def _pick_block_b(b, hbm_row_bytes, vmem_row_bytes, vmem_limit_bytes,
                  target_hbm_bytes=6 << 20):
    """Batch rows per grid step: ~target_hbm_bytes of HBM traffic per step,
    double-buffered-I/O + f32 intermediates within the VMEM budget, and a
    grid of >=2 (preferably even) steps so both v7x TensorCores stay busy."""
    by_hbm = target_hbm_bytes // max(hbm_row_bytes, 1)
    by_vmem = (vmem_limit_bytes * 4 // 5) // max(vmem_row_bytes, 1)
    tb = max(1, min(b, by_hbm, by_vmem))
    if b >= 2:
        tb = min(tb, pl.cdiv(b, 2))             # keep >= 2 grid steps
    g = pl.cdiv(b, tb)
    if g > 1 and g % 2 == 1:                    # prefer an even step count
        tb = max(1, pl.cdiv(b, g + 1))
    return tb


def gmm_posterior_forward(means, precisions, eps, component_idx, *,
                          block_b=None, samples_dtype=None):
    """Pallas implementation of DiagonalGaussianMixturePosterior.forward.

    means, precisions : [b, m, z]
    eps               : [b, s, z]  standard-normal noise (bf16 recommended)
    component_idx     : [b, s]     int component choice (equal-weight categorical)
    returns (samples [b, s, z], log_probs [b, s])
    """
    b, m, z = means.shape
    s = eps.shape[1]
    samples_dtype = jnp.dtype(samples_dtype or means.dtype)
    idx3 = component_idx.astype(jnp.int32).reshape(b, s, 1)

    vmem_limit = _vmem_limit_bytes()
    if block_b is None:
        hbm_row = (2 * m * z * means.dtype.itemsize        # means + precisions
                   + s * z * eps.dtype.itemsize            # eps
                   + 4 * s                                  # idx
                   + s * z * samples_dtype.itemsize        # samples out
                   + 4 * s)                                 # logp out
        # Double-buffered I/O + f32 working set (p/std/mu*p, ohc, selected
        # mean/std, samples, x^2, and the (m,s) quad/lp/exp slabs).
        vmem_row = 2 * hbm_row + 4 * (6 * m * z + 6 * s * z + 5 * s * m)
        block_b = _pick_block_b(b, hbm_row, vmem_row, vmem_limit)

    grid = (pl.cdiv(b, block_b),)               # non-divisor b: last block masked

    samples, logp = pl.pallas_call(
        _gmm_posterior_kernel,
        out_shape=(
            jax.ShapeDtypeStruct((b, s, z), samples_dtype),
            jax.ShapeDtypeStruct((b, 1, s), jnp.float32),
        ),
        grid=grid,
        in_specs=[
            pl.BlockSpec((block_b, m, z), lambda i: (i, 0, 0)),
            pl.BlockSpec((block_b, m, z), lambda i: (i, 0, 0)),
            pl.BlockSpec((block_b, s, z), lambda i: (i, 0, 0)),
            pl.BlockSpec((block_b, s, 1), lambda i: (i, 0, 0)),
        ],
        out_specs=(
            pl.BlockSpec((block_b, s, z), lambda i: (i, 0, 0)),
            pl.BlockSpec((block_b, 1, s), lambda i: (i, 0, 0)),
        ),
        compiler_params=pltpu.CompilerParams(
            dimension_semantics=("parallel",),
            vmem_limit_bytes=vmem_limit,
        ),
    )(means, precisions, eps, idx3)

    return samples, logp[:, 0, :]


def reference_forward(means, precisions, eps, component_idx):
    """Pure-JAX reference mirroring the PyTorch forward with the same eps/idx
    (exact gather + diff-form log-prob, no matmuls -> no precision ambiguity)."""
    f32 = jnp.float32
    p = precisions.astype(f32) + EPS                                # (b, m, z)
    std = jnp.sqrt(1.0 / p)                                         # (b, m, z)
    idx = component_idx.astype(jnp.int32)[:, :, None]               # (b, s, 1)
    sel_mean = jnp.take_along_axis(means.astype(f32), idx, axis=1)  # (b, s, z)
    sel_std = jnp.take_along_axis(std, idx, axis=1)                 # (b, s, z)
    samples = sel_mean + sel_std * eps.astype(f32)                  # (b, s, z)
    diff = samples[:, :, None, :] - means.astype(f32)[:, None, :, :]
    lp = (-0.5 * diff * diff * p[:, None]
          + 0.5 * jnp.log(p)[:, None] - 0.5 * LOG_2PI)              # (b, s, m, z)
    lp = jnp.sum(lp, axis=-1) - math.log(float(means.shape[1]))     # (b, s, m)
    log_probs = jax.scipy.special.logsumexp(lp, axis=-1)            # (b, s)
    return samples, log_probs


if __name__ == "__main__":
    b, m, z, s = 2, 4, 32, 8  # batch, mixture components, latent dim, n_samples

    key = jax.random.PRNGKey(0)
    k1, k2, k3, k4 = jax.random.split(key, 4)

    means = jax.random.normal(k1, (b, m, z), dtype=jnp.float32)
    precisions = jax.nn.softplus(jax.random.normal(k2, (b, m, z),
                                                   dtype=jnp.float32)) + 0.1
    # Reduced reparameterization noise: one draw per (batch, sample), stored in
    # bf16 for HBM bandwidth; distributionally equivalent to the PyTorch
    # per-component rsample followed by the one-hot selection.
    eps = jax.random.normal(k3, (b, s, z), dtype=jnp.float32).astype(jnp.bfloat16)
    # Equal-probability categorical component choice per (batch, sample).
    component_idx = jax.random.randint(k4, (b, s), 0, m, dtype=jnp.int32)

    samples, log_probs = gmm_posterior_forward(means, precisions, eps,
                                               component_idx)
    samples = jax.block_until_ready(samples)
    log_probs = jax.block_until_ready(log_probs)

    ref_samples, ref_log_probs = reference_forward(means, precisions, eps,
                                                   component_idx)
    assert samples.shape == (b, s, z)
    assert log_probs.shape == (b, s)
    assert jnp.allclose(samples, ref_samples, atol=1e-4, rtol=1e-4)
    assert jnp.allclose(log_probs, ref_log_probs, atol=1e-4, rtol=1e-4)

    print("KERNEL_OK")
</pallas_src>

<mosaic_0001>
module attributes {stable_mosaic.version = 11 : i64} {
  func.func @_gmm_posterior_kernel(%arg0: i32, %arg1: memref<1x4x32xf32, #tpu.memory_space<vmem>>, %arg2: memref<1x4x32xf32, #tpu.memory_space<vmem>>, %arg3: memref<1x8x32xbf16, #tpu.memory_space<vmem>>, %arg4: memref<1x8x1xi32, #tpu.memory_space<vmem>>, %arg5: memref<1x8x32xf32, #tpu.memory_space<vmem>>, %arg6: memref<1x1x8xf32, #tpu.memory_space<vmem>>) attributes {dimension_semantics = [#tpu.dimension_semantics<parallel>], iteration_bounds = array<i64: 2>, scalar_prefetch = 0 : i64, scratch_operands = 0 : i64, tpu.core_type = #tpu.core_type<tc>, window_params = [{transform_indices = @transform_0, window_bounds = array<i64: 1, 4, 32>}, {transform_indices = @transform_1, window_bounds = array<i64: 1, 4, 32>}, {transform_indices = @transform_2, window_bounds = array<i64: 1, 8, 32>}, {transform_indices = @transform_3, window_bounds = array<i64: 1, 8, 1>}, {transform_indices = @transform_4, window_bounds = array<i64: 1, 8, 32>}, {transform_indices = @transform_5, window_bounds = array<i64: 1, 1, 8>}]} {
    %c0 = arith.constant 0 : index
    %c0_0 = arith.constant 0 : index
    %c0_1 = arith.constant 0 : index
    %0 = vector.load %arg1[%c0, %c0_0, %c0_1] : memref<1x4x32xf32, #tpu.memory_space<vmem>>, vector<1x4x32xf32>
    %c0_2 = arith.constant 0 : index
    %c0_3 = arith.constant 0 : index
    %c0_4 = arith.constant 0 : index
    %1 = vector.load %arg2[%c0_2, %c0_3, %c0_4] : memref<1x4x32xf32, #tpu.memory_space<vmem>>, vector<1x4x32xf32>
    %cst = arith.constant 9.99999974E-6 : f32
    %2 = vector.broadcast %cst : f32 to vector<1x4x32xf32>
    %3 = arith.addf %1, %2 : vector<1x4x32xf32>
    %c0_5 = arith.constant 0 : index
    %c0_6 = arith.constant 0 : index
    %c0_7 = arith.constant 0 : index
    %4 = vector.load %arg3[%c0_5, %c0_6, %c0_7] : memref<1x8x32xbf16, #tpu.memory_space<vmem>>, vector<1x8x32xbf16>
    %5 = arith.extf %4 : vector<1x8x32xbf16> to vector<1x8x32xf32>
    %c0_8 = arith.constant 0 : index
    %c0_9 = arith.constant 0 : index
    %c0_10 = arith.constant 0 : index
    %6 = vector.load %arg4[%c0_8, %c0_9, %c0_10] : memref<1x8x1xi32, #tpu.memory_space<vmem>>, vector<1x8x1xi32>
    %7 = math.rsqrt %3 : vector<1x4x32xf32>
    %8 = tpu.iota {dimensions = array<i32: 2>} : vector<1x8x4xi32>
    %9 = vector.broadcast %6 : vector<1x8x1xi32> to vector<1x8x4xi32>
    %10 = arith.cmpi eq, %8, %9 : vector<1x8x4xi32>
    %11 = arith.extui %10 : vector<1x8x4xi1> to vector<1x8x4xi32>
    %12 = arith.sitofp %11 : vector<1x8x4xi32> to vector<1x8x4xf32>
    "tpu.trace_start"() <{level = 10 : i32, message = "bsm,bmz->bsz"}> : () -> ()
    %cst_11 = arith.constant dense<0.000000e+00> : vector<1x8x32xf32>
    %13 = tpu.matmul %12, %0, %cst_11 {dimension_numbers = #tpu.dot_dimension_numbers<[2], [1], [1], [2], [0, 0, 0, 1, 1, 2], [0], [0]>, precision = #tpu.contract_precision<fp32>} : vector<1x8x4xf32>, vector<1x4x32xf32>, vector<1x8x32xf32> -> vector<1x8x32xf32>
    %cst_12 = arith.constant dense<0.000000e+00> : vector<1x8x32xf32>
    %14 = tpu.matmul %12, %7, %cst_12 {dimension_numbers = #tpu.dot_dimension_numbers<[2], [1], [1], [2], [0, 0, 0, 1, 1, 2], [0], [0]>, precision = #tpu.contract_precision<fp32>} : vector<1x8x4xf32>, vector<1x4x32xf32>, vector<1x8x32xf32> -> vector<1x8x32xf32>
    "tpu.trace_stop"() : () -> ()
    %15 = arith.mulf %14, %5 : vector<1x8x32xf32>
    %16 = arith.addf %13, %15 : vector<1x8x32xf32>
    %c0_13 = arith.constant 0 : index
    %c0_14 = arith.constant 0 : index
    %c0_15 = arith.constant 0 : index
    %17 = vector.load %arg5[%c0_13, %c0_14, %c0_15] : memref<1x8x32xf32, #tpu.memory_space<vmem>>, vector<1x8x32xf32>
    tpu.vector_store %arg5[%c0_13, %c0_14, %c0_15], %16 {strides = array<i32>} : memref<1x8x32xf32, #tpu.memory_space<vmem>>, vector<1x8x32xf32>,
    %18 = arith.mulf %0, %3 : vector<1x4x32xf32>
    %19 = arith.mulf %16, %16 : vector<1x8x32xf32>
    "tpu.trace_start"() <{level = 10 : i32, message = "bmz,bsz->bms"}> : () -> ()
    %cst_16 = arith.constant dense<0.000000e+00> : vector<1x4x8xf32>
    %20 = tpu.matmul %3, %19, %cst_16 {dimension_numbers = #tpu.dot_dimension_numbers<[2], [2], [1], [1], [0, 0, 0, 1, 1, 1], [0], [0]>, precision = #tpu.contract_precision<fp32>} : vector<1x4x32xf32>, vector<1x8x32xf32>, vector<1x4x8xf32> -> vector<1x4x8xf32>
    %cst_17 = arith.constant dense<0.000000e+00> : vector<1x4x8xf32>
    %21 = tpu.matmul %18, %16, %cst_17 {dimension_numbers = #tpu.dot_dimension_numbers<[2], [2], [1], [1], [0, 0, 0, 1, 1, 1], [0], [0]>, precision = #tpu.contract_precision<fp32>} : vector<1x4x32xf32>, vector<1x8x32xf32>, vector<1x4x8xf32> -> vector<1x4x8xf32>
    "tpu.trace_stop"() : () -> ()
    %cst_18 = arith.constant 2.000000e+00 : f32
    %22 = vector.broadcast %cst_18 : f32 to vector<1x4x8xf32>
    %23 = arith.mulf %22, %21 : vector<1x4x8xf32>
    %24 = arith.subf %20, %23 : vector<1x4x8xf32>
    %25 = arith.mulf %18, %0 : vector<1x4x32xf32>
    %cst_19 = arith.constant dense<0.000000e+00> : vector<1x4xf32>
    %26 = vector.multi_reduction <add>, %25, %cst_19 [2] : vector<1x4x32xf32> to vector<1x4xf32>
    %27 = vector.shape_cast %26 : vector<1x4xf32> to vector<1x4x1xf32>
    %28 = vector.broadcast %27 : vector<1x4x1xf32> to vector<1x4x8xf32>
    %29 = arith.addf %24, %28 : vector<1x4x8xf32>
    %30 = math.log %3 : vector<1x4x32xf32>
    %cst_20 = arith.constant dense<0.000000e+00> : vector<1x4xf32>
    %31 = vector.multi_reduction <add>, %30, %cst_20 [2] : vector<1x4x32xf32> to vector<1x4xf32>
    %32 = vector.shape_cast %31 : vector<1x4xf32> to vector<1x4x1xf32>
    %cst_21 = arith.constant -5.000000e-01 : f32
    %33 = vector.broadcast %cst_21 : f32 to vector<1x4x8xf32>
    %34 = arith.mulf %33, %29 : vector<1x4x8xf32>
    %cst_22 = arith.constant 5.000000e-01 : f32
    %35 = vector.broadcast %cst_22 : f32 to vector<1x4x1xf32>
    %36 = arith.mulf %35, %32 : vector<1x4x1xf32>
    %37 = vector.broadcast %36 : vector<1x4x1xf32> to vector<1x4x8xf32>
    %38 = arith.addf %34, %37 : vector<1x4x8xf32>
    %cst_23 = arith.constant 30.7923279 : f32
    %39 = vector.broadcast %cst_23 : f32 to vector<1x4x8xf32>
    %40 = arith.subf %38, %39 : vector<1x4x8xf32>
    %cst_24 = arith.constant dense<0xFF800000> : vector<1x8xf32>
    %41 = vector.multi_reduction <maximumf>, %40, %cst_24 [1] : vector<1x4x8xf32> to vector<1x8xf32>
    %42 = vector.shape_cast %41 : vector<1x8xf32> to vector<1x1x8xf32>
    %43 = vector.broadcast %42 : vector<1x1x8xf32> to vector<1x4x8xf32>
    %44 = arith.subf %40, %43 : vector<1x4x8xf32>
    %45 = math.exp %44 : vector<1x4x8xf32>
    %cst_25 = arith.constant dense<0.000000e+00> : vector<1x8xf32>
    %46 = vector.multi_reduction <add>, %45, %cst_25 [1] : vector<1x4x8xf32> to vector<1x8xf32>
    %47 = vector.shape_cast %46 : vector<1x8xf32> to vector<1x1x8xf32>
    %48 = math.log %47 : vector<1x1x8xf32>
    %49 = arith.addf %42, %48 : vector<1x1x8xf32>
    %c0_26 = arith.constant 0 : index
    %c0_27 = arith.constant 0 : index
    %c0_28 = arith.constant 0 : index
    %50 = vector.load %arg6[%c0_26, %c0_27, %c0_28] : memref<1x1x8xf32, #tpu.memory_space<vmem>>, vector<1x1x8xf32>
    tpu.vector_store %arg6[%c0_26, %c0_27, %c0_28], %49 {strides = array<i32>} : memref<1x1x8xf32, #tpu.memory_space<vmem>>, vector<1x1x8xf32>,
    return
  }
  func.func @transform_0(%arg0: i32) -> (i32, i32, i32) {
    %c0_i32 = arith.constant 0 : i32
    %c0_i32_0 = arith.constant 0 : i32
    %c0_i32_1 = arith.constant 0 : i32
    return %arg0, %c0_i32, %c0_i32_0 : i32, i32, i32
  }
  func.func @transform_1(%arg0: i32) -> (i32, i32, i32) {
    %c0_i32 = arith.constant 0 : i32
    %c0_i32_0 = arith.constant 0 : i32
    %c0_i32_1 = arith.constant 0 : i32
    return %arg0, %c0_i32, %c0_i32_0 : i32, i32, i32
  }
  func.func @transform_2(%arg0: i32) -> (i32, i32, i32) {
    %c0_i32 = arith.constant 0 : i32
    %c0_i32_0 = arith.constant 0 : i32
    %c0_i32_1 = arith.constant 0 : i32
    return %arg0, %c0_i32, %c0_i32_0 : i32, i32, i32
  }
  func.func @transform_3(%arg0: i32) -> (i32, i32, i32) {
    %c0_i32 = arith.constant 0 : i32
    %c0_i32_0 = arith.constant 0 : i32
    %c0_i32_1 = arith.constant 0 : i32
    return %arg0, %c0_i32, %c0_i32_0 : i32, i32, i32
  }
  func.func @transform_4(%arg0: i32) -> (i32, i32, i32) {
    %c0_i32 = arith.constant 0 : i32
    %c0_i32_0 = arith.constant 0 : i32
    %c0_i32_1 = arith.constant 0 : i32
    return %arg0, %c0_i32, %c0_i32_0 : i32, i32, i32
  }
  func.func @transform_5(%arg0: i32) -> (i32, i32, i32) {
    %c0_i32 = arith.constant 0 : i32
    %c0_i32_0 = arith.constant 0 : i32
    %c0_i32_1 = arith.constant 0 : i32
    return %arg0, %c0_i32, %c0_i32_0 : i32, i32, i32
  }
}

</mosaic_0001>

<bundles_post_ra>
// kernel: tpu_custom_call.1
= control target key start
LH: loop header
LB: loop body
LE: loop exit
PB: predicated region body
PF: predicated region fallthrough
CT: control target
= control target key end

     0   :  { %11 = vsyncpa [#allocation3], 0  ;;  %s2981_s0 = inlined_call_operand.vmem [shape: f32[2,4,32], index: 0, kind: input, shape index: {}]   ;;  %s2982_s1 = inlined_call_operand.vmem [shape: f32[2,4,32], index: 1, kind: input, shape index: {}]   ;;  %s2983_s2 = inlined_call_operand.vmem [shape: bf16[2,8,32], index: 2, kind: input, shape index: {}]   ;;  %s2984_s3 = inlined_call_operand.vmem [shape: s32[2,8,1], index: 3, kind: input, shape index: {}]   ;;  %s2985_s4 = inlined_call_operand.hbm [shape: f32[2,8,32], index: 4, kind: output, shape index: {0}]   ;;  %s2986_s5 = inlined_call_operand.hbm [shape: f32[2,1,8], index: 5, kind: output, shape index: {1}]  }
   0x1   :  { %13 = vsyncpa [#allocation3 + $0x1], 0 }
   0x2   :  { %14 = vsyncpa [#allocation5], 0 }
   0x3   :  { %16 = vsyncpa [#allocation5 + $0x1], 0  ;;  %s2720_s18 = smov 0   ;;  %s2722_s19 = smov 0  }
   0x4   :  { %s2724_s20 = smov 0   ;;  %s2726_s21 = smov 0  }
   0x5 LB: > { %s2741_s22 = sadd.s32 4294967295, %s2683_s21   ;;  %s2302_s23 = sadd.s32 4294967294, %s2683_s21   ;;  %s2683_s21 = sphi %s2726_s21, %s2992_s21   ;;  %s2679_s20 = sphi %s2724_s20, %s2991_s20   ;;  %s2675_s19 = sphi %s2722_s19, %s2990_s19   ;;  %s2671_s18 = sphi %s2720_s18, %s2989_s18  }
   0x6   : > { %s2745_s24 = sadd.s32 1, %s2683_s21   ;;  %s133_s25 = sadd.s32 1, %s2679_s20 }
   0x7   : > { %s130_s26 = ssub.s32 %s2683_s21, %s2745_s24  ;;  %p143_p0 = scmp.ne.s32.totalorder %s2679_s20, %s2675_s19 }
   0x8   : > { %p131_p1 = scmp.eq.s32.totalorder %s130_s26, 0  ;;  %p144_p2 = scmp.eq.s32.totalorder %s2741_s22, 1 }
   0x9   : > { %p149_p3 = scmp.ne.s32.totalorder %s2675_s19, %s2671_s18  ;;  %p150_p4 = scmp.eq.s32.totalorder %s2302_s23, 1 }
   0xa   : > { %s2756_s27 = scalar_select %p131_p1, %s2679_s20, %s133_s25  }
   0xb   : > { %p2758_p5 = por %p144_p2, %p143_p0  ;;  %p2762_p6 = por %p150_p4, %p149_p3 }
   0xc   : > { %p2305_p7 = scmp.ge.s32.totalorder %s2683_s21, 1  ;;  %p222_p8 = scmp.lt.s32.totalorder %s2683_s21, 3 }
   0xe   : > { %p223_p9 = pnand %p2305_p7, %p222_p8 }
   0xf   : > { %p265_p10 = scmp.lt.s32.totalorder (!%p223_p9), %s2741_s22, 1  ;;  %v2685_v0 = vmov (!%p223_p9), 0   ;;  %v2686_v1 = vmov (!%p223_p9), 0.0   ;;  %vm300_vm0 = vcmask (!%p223_p9), 1043456   ;;  %vm2687_vm1 = vmmov (!%p223_p9), 0   ;;  %s2862_s26 = sand.u32 (!%p223_p9), 1, %s2675_s19  }
  0x10   : > { %226 = sbr.rel (%p223_p9) target bundleno = 763 (0x2fb), region = 36  ;;  %2580 = vset.pattern.permute.xlu0 (!%p223_p9), %v2685_v0  ;;  %2372 = vmatprep.subr.mxu0 (!%p223_p9), %v2686_v1  ;;  %v288_v11 = vlaneseq (!%p223_p9)  ;;  %vm296_vm2 = vcmask (!%p223_p9), 31744   ;;  %vm2111_vm4 = vcmask (!%p223_p9), 257024   ;;  %vm1200_vm5 = vcmask (!%p223_p9), 261120   ;;  %s2149_s12 = scalar_lea.sflag (!%p223_p9), [#allocation3], %s2862_s26 }
  0x11   : > { %2402 = vmatprep.subr.mxu1 (!%p223_p9), %v2686_v1  ;;  %2374 = vmatprep.mubr.msk.f32.mxu0 (!%p223_p9), %vm2687_vm1, %v2686_v1  ;;  %s2688_s14 = smov (!%p223_p9), [#allocation2]  }
  0x12   : > { %2404 = vmatprep.mubr.msk.f32.mxu1 (!%p223_p9), %vm2687_vm1, %v2686_v1  ;;  %v289_v12 = vand.u32 (!%p223_p9), 127, %v288_v11  ;;  %s2593_s15 = sshll.u32 (!%p223_p9), %s2688_s14, 4  ;;  %s2594_s15 = int_to_ptr.vmem [resolvable:$false] %s2593_s15 }
  0x17   : > { %s266_s30 = scalar_select %p265_p10, %s2741_s22, 1 }
  0x19   : > { %s2310_s6 = sshll.u32 %s266_s30, 3  ;;  %s2772_s7 = sshll.u32 %s266_s30, 2 }
  0x1a   : > { %s280_s10 = scalar_lea.vmem %s2984_s3, %s2310_s6  ;;  %s268_s13 = scalar_lea.vmem %s2981_s0, %s2772_s7 }
  0x1b   : > { %v286_v2 = vld [vmem:[%s280_s10] sm:$0xff]  ;;  %s272_s16 = scalar_lea.vmem %s2982_s1, %s2772_s7  ;;  %s276_s25 = scalar_lea.vmem %s2983_s2, %s2772_s7 }
  0x1c   : > { %v2785_v3 = vld [vmem:[%s268_s13] sm:$0xf]  ;;  %291 = vperm.xlu0 %2580, %v286_v2   ;;  %s2306_s30 = sshll.u32 %s2862_s26, 3  ;;  %s2320_s7 = sshll.u32 %s2741_s22, 7 }
  0x1d   : > { %v282_v4 = vld [vmem:[%s272_s16] sm:$0xf]  ;;  %v752_v6 = vsel %vm300_vm0, %v2785_v3, 0  ;;  %s2867_s6 = scalar_lea.vmem [#allocation2], %s2306_s30  ;;  %s2912_s10 = scalar_lea.hbm %s2985_s4, %s2320_s7 }
  0x1e   : > { %v2787_v5 = vadd.f32 1e-05, %v282_v4  ;;  %v2795_v7 = vand.u32 4294901760, %v752_v6  ;;  %v284_v38 = vld [vmem:[%s276_s25] sm:$0xf]  ;;  %s2166_s11 = sshll.u32 %s2867_s6, 4  ;;  %s2167_s11 = int_to_ptr.vmem [resolvable:$true] %s2166_s11 }
  0x1f   : > { %v285_v40 = vunpack.c.l.bf16 %v284_v38  ;;  %s2589_s13 = scalar_lea.vmem %s2167_s11, 128  ;;  %s2595_s16 = scalar_lea.vmem %s2594_s15, 256 }
  0x20   : > { %2581 = vrsqrt.f32 %v2787_v5  ;;  %2403 = vmatpush3.msra.mxu1 %v2795_v7  ;;  %v832_v14 = vsub.f32 %v752_v6, %v2795_v7  ;;  %v1202_v28 = vmul.f32 %v2787_v5, %v2785_v3  ;;  %v1205_v35 = vsel %vm1200_vm5, %v2787_v5, 0  ;;  %p2590_p11 = scmp.ne.s32.totalorder %s2167_s11, %s2589_s13  ;;  %p2596_p0 = scmp.lt.s32.totalorder %s2167_s11, %s2594_s15 }
  0x21   : > { %2407 = vmatprep.subr.mxu1 %v2686_v1  ;;  %2583 = vlog2.f32 %v2787_v5  ;;  %v2858_v37 = vand.u32 4294901760, %v1205_v35  ;;  %p2597_p1 = scmp.lt.s32.totalorder %s2595_s16, %s2589_s13 }
  0x22   : > { %v833_v18 = vand.u32 4294901760, %v832_v14  ;;  %v2110_v29 = vmul.f32 %v1202_v28, %v2785_v3  ;;  %v1657_v34 = vsel %vm1200_vm5, %v1202_v28, 0  ;;  %p2591_p12 = pnand %p2590_p11, %p2758_p5 }
  0x23   : > { %v2856_v36 = vand.u32 4294901760, %v1657_v34  ;;  %v1277_v41 = vsub.f32 %v1205_v35, %v2858_v37  ;;  %p2598_p2 = por %p2597_p1, %p2596_p0 }
  0x24   : > { %v834_v23 = vsub.f32 %v832_v14, %v833_v18  ;;  %v2112_v30 = vsel %vm2111_vm4, %v2110_v29, 0.0  ;;  %p2592_p13 = pneg %p2591_p12 }
  0x25   : > { %v1729_v39 = vsub.f32 %v1657_v34, %v2856_v36  ;;  %v1278_v48 = vand.u32 4294901760, %v1277_v41 }
  0x26   : > { %v835_v27 = vand.u32 4294901760, %v834_v23  ;;  %p2599_p3 = pnand %p2598_p2, %p2592_p13 }
  0x27   : > { %v1730_v42 = vand.u32 4294901760, %v1729_v39  ;;  %v1279_v53 = vsub.f32 %v1277_v41, %v1278_v48 }
  0x29   : > { %v1731_v50 = vsub.f32 %v1729_v39, %v1730_v42  ;;  %v1280_v59 = vand.u32 4294901760, %v1279_v53 }
  0x2a   : > { %v2582_v8 = vpop.eup %2581 }
  0x2b   : > { %v302_v9 = vsel %vm300_vm0, %v2582_v8, 0  ;;  %v2584_v31 = vpop.eup %2583  ;;  %v1732_v56 = vand.u32 4294901760, %v1731_v50 }
  0x2c   : > { %v305_v10 = vand.u32 4294901760, %v302_v9  ;;  %v2117_v32 = vmul.f32 0.6931472, %v2584_v31 }
  0x2e   : > { %2373 = vmatpush3.msra.mxu0 %v305_v10  ;;  %v382_v13 = vsub.f32 %v302_v9, %v305_v10  ;;  %v2118_v33 = vsel %vm2111_vm4, %v2117_v32, 0.0 }
  0x2f   : > { %2377 = vmatprep.subr.mxu0 %v2686_v1  ;;  %2119 = vadd.xlane.f32.xlu1 %v2118_v33 }
  0x30   : > { %v383_v16 = vand.u32 4294901760, %v382_v13 }
  0x32   : > { %v384_v21 = vsub.f32 %v382_v13, %v383_v16 }
  0x34   : > { %v385_v25 = vand.u32 4294901760, %v384_v21 }
  0x3b   : > { %2113 = vadd.xlane.f32.xlu0 %v2112_v30 }
  0x9b   : > { %v292_v15 = vpop.permute.xlu0 %291 }
  0x9c   : > { %vm293_vm3 = vcmp.eq.s32.totalorder %v289_v12, %v292_v15 }
  0x9d   : > { %v2311_v17 = vsel %vm293_vm3, 1.0, %v2686_v1 }
  0x9e   : > { %v298_v19 = vsel %vm296_vm2, %v2311_v17, 0 }
  0x9f   : > { %v371_v20 = vsub.f32 %v298_v19, %v298_v19 }
  0xa1   : > { %v372_v22 = vand.u32 4294901760, %v371_v20 }
  0xa3   : > { %v373_v24 = vsub.f32 %v371_v20, %v372_v22 }
  0xa5   : > { %v374_v26 = vand.u32 4294901760, %v373_v24 }
  0xa7   : > { %2375 = vmatmul.mubr.f32.vlgmr.msra.gmra.mrb[0].mxu0 %v374_v26  ;;  %2405 = vmatmul.mubr.f32.vlgmr.msra.gmra.mrb[0].mxu1 %v374_v26 }
  0xa8   : > { %2378 = vmatpush3.msra.mxu0 %v385_v25  ;;  %2379 = vmatprep.mubr.msk.f32.mxu0 %vm2687_vm1, %v2686_v1 }
  0xa9   : > { %2408 = vmatpush3.msra.mxu1 %v835_v27  ;;  %2409 = vmatprep.mubr.msk.f32.mxu1 %vm2687_vm1, %v2686_v1 }
  0xaa   : > { %2382 = vmatprep.subr.mxu0 %v2686_v1  ;;  %2412 = vmatprep.subr.mxu1 %v2686_v1 }
  0xaf   : > { %2380 = vmatmul.mubr.msk.f32.vlgmr.msra.gmra.mrb[0].mxu0 %vm296_vm2, %v2311_v17  ;;  %2410 = vmatmul.mubr.msk.f32.vlgmr.msra.gmra.mrb[0].mxu1 %vm296_vm2, %v2311_v17 }
  0xb0   : > { %2383 = vmatpush3.msra.mxu0 %v382_v13  ;;  %2384 = vmatprep.mubr.msk.f32.mxu0 %vm2687_vm1, %v2686_v1 }
  0xb1   : > { %2413 = vmatpush3.msra.mxu1 %v832_v14  ;;  %2414 = vmatprep.mubr.msk.f32.mxu1 %vm2687_vm1, %v2686_v1 }
  0xb2   : > { %2387 = vmatprep.subr.mxu0 %v2686_v1  ;;  %2417 = vmatprep.subr.mxu1 %v2686_v1 }
  0xb7   : > { %2385 = vmatmul.mubr.f32.vlgmr.msra.gmra.mrb[0].mxu0 %v371_v20  ;;  %2415 = vmatmul.mubr.f32.vlgmr.msra.gmra.mrb[0].mxu1 %v371_v20 }
  0xb8   : > { %2388 = vmatpush3.msra.mxu0 %v305_v10  ;;  %2389 = vmatprep.mubr.msk.f32.mxu0 %vm2687_vm1, %v2686_v1 }
  0xb9   : > { %2418 = vmatpush3.msra.mxu1 %v2795_v7  ;;  %2419 = vmatprep.mubr.msk.f32.mxu1 %vm2687_vm1, %v2686_v1 }
  0xba   : > { %2392 = vmatprep.subr.mxu0 %v2686_v1  ;;  %2422 = vmatprep.subr.mxu1 %v2686_v1 }
  0xbf   : > { %2390 = vmatmul.mubr.f32.vlgmr.msra.gmra.mrb[0].mxu0 %v372_v22  ;;  %2420 = vmatmul.mubr.f32.vlgmr.msra.gmra.mrb[0].mxu1 %v372_v22 }
  0xc0   : > { %2393 = vmatpush3.msra.mxu0 %v383_v16  ;;  %2394 = vmatprep.mubr.msk.f32.mxu0 %vm2687_vm1, %v2686_v1 }
  0xc1   : > { %2423 = vmatpush3.msra.mxu1 %v833_v18  ;;  %2424 = vmatprep.mubr.msk.f32.mxu1 %vm2687_vm1, %v2686_v1 }
  0xc2   : > { %2397 = vmatprep.subr.mxu0 %v2686_v1  ;;  %2427 = vmatprep.subr.mxu1 %v2686_v1 }
  0xc7   : > { %2395 = vmatmul.mubr.msk.f32.vlgmr.msra.gmra.mrb[0].mxu0 %vm296_vm2, %v2311_v17  ;;  %2425 = vmatmul.mubr.msk.f32.vlgmr.msra.gmra.mrb[0].mxu1 %vm296_vm2, %v2311_v17 }
  0xc8   : > { %2398 = vmatpush3.msra.mxu0 %v305_v10  ;;  %2399 = vmatprep.mubr.msk.f32.mxu0 %vm2687_vm1, %v2686_v1 }
  0xc9   : > { %2428 = vmatpush3.msra.mxu1 %v2795_v7  ;;  %2429 = vmatprep.mubr.msk.f32.mxu1 %vm2687_vm1, %v2686_v1 }
  0xca   : > { %2462 = vmatprep.subr.mxu1 %v2686_v1  ;;  %2432 = vmatprep.subr.mxu0 %v2686_v1 }
  0xcf   : > { %2400 = vmatmul.mubr.msk.f32.vlgmr.msra.gmra.mrb[0].mxu0 %vm296_vm2, %v2311_v17  ;;  %2430 = vmatmul.mubr.msk.f32.vlgmr.msra.gmra.mrb[0].mxu1 %vm296_vm2, %v2311_v17 }
  0xd0   : > { %2464 = vmatprep.mubr.msk.f32.mxu1 %vm2687_vm1, %v2686_v1  ;;  %2434 = vmatprep.mubr.msk.f32.mxu0 %vm2687_vm1, %v2686_v1 }
 0x1a2   : > { %v746_v43 = vpop.f32.mrb[0].mxu0  ;;  %v1196_v44 = vpop.f32.mrb[0].mxu1 }
 0x1a3   : > { %v750_v45 = vmul.f32 %v746_v43, %v285_v40  ;;  %v2401_v46 = vpop.f32.mrb[1].mxu0  ;;  %v2431_v47 = vpop.f32.mrb[1].mxu1 }
 0x1a5   : > { %v2492_v49 = vadd.f32 %v1196_v44, %v750_v45 }
 0x1a7   : > { %v1203_v51 = vmul.f32 %v2492_v49, %v2492_v49  ;;  %v1660_v52 = vsel %vm1200_vm5, %v2492_v49, 0  ;;  %1201 = vst.msk [vmem:[%s2867_s6] sm:$0xff] %vm1200_vm5, %v2492_v49 }
 0x1a8   : > { %v1663_v54 = vand.u32 4294901760, %v1660_v52 }
 0x1a9   : > { %v1208_v55 = vsel %vm1200_vm5, %v1203_v51, 0 }
 0x1aa   : > { %v1740_v57 = vsub.f32 %v1660_v52, %v1663_v54  ;;  %2463 = vmatpush3.xpose.msra.mxu1 %v1663_v54  ;;  %v1211_v58 = vand.u32 4294901760, %v1208_v55 }
 0x1ab   : > { %2467 = vmatprep.subr.mxu1 %v2686_v1 }
 0x1ac   : > { %2433 = vmatpush3.xpose.msra.mxu0 %v1211_v58  ;;  %v1741_v60 = vand.u32 4294901760, %v1740_v57  ;;  %v1288_v61 = vsub.f32 %v1208_v55, %v1211_v58 }
 0x1ad   : > { %2465 = vmatmul.mubr.f32.vlgmr.msra.gmra.mrb[2].mxu1 %v1732_v56  ;;  %2437 = vmatprep.subr.mxu0 %v2686_v1 }
 0x1ae   : > { %v1742_v62 = vsub.f32 %v1740_v57, %v1741_v60  ;;  %v1289_v63 = vand.u32 4294901760, %v1288_v61  ;;  %2469 = vmatprep.mubr.msk.f32.mxu1 %vm2687_vm1, %v2686_v1 }
 0x1af   : > { %2435 = vmatmul.mubr.f32.vlgmr.msra.gmra.mrb[2].mxu0 %v1280_v59 }
 0x1b0   : > { %v1743_v0 = vand.u32 4294901760, %v1742_v62  ;;  %v1290_v2 = vsub.f32 %v1288_v61, %v1289_v63  ;;  %2439 = vmatprep.mubr.msk.f32.mxu0 %vm2687_vm1, %v2686_v1 }
 0x1b2   : > { %2468 = vmatpush3.xpose.msra.mxu1 %v1743_v0  ;;  %v1291_v3 = vand.u32 4294901760, %v1290_v2 }
 0x1b3   : > { %2472 = vmatprep.subr.mxu1 %v2686_v1 }
 0x1b4   : > { %2438 = vmatpush3.xpose.msra.mxu0 %v1291_v3 }
 0x1b5   : > { %2470 = vmatmul.mubr.f32.vlgmr.msra.gmra.mrb[2].mxu1 %v2856_v36  ;;  %2442 = vmatprep.subr.mxu0 %v2686_v1 }
 0x1b6   : > { %2473 = vmatpush3.xpose.msra.mxu1 %v1740_v57  ;;  %2474 = vmatprep.mubr.msk.f32.mxu1 %vm2687_vm1, %v2686_v1 }
 0x1b7   : > { %2440 = vmatmul.mubr.f32.vlgmr.msra.gmra.mrb[2].mxu0 %v2858_v37  ;;  %2477 = vmatprep.subr.mxu1 %v2686_v1 }
 0x1b8   : > { %2443 = vmatpush3.xpose.msra.mxu0 %v1288_v61  ;;  %2444 = vmatprep.mubr.msk.f32.mxu0 %vm2687_vm1, %v2686_v1 }
 0x1b9   : > { %2447 = vmatprep.subr.mxu0 %v2686_v1 }
 0x1bd   : > { %2475 = vmatmul.mubr.f32.vlgmr.msra.gmra.mrb[2].mxu1 %v1729_v39 }
 0x1be   : > { %2478 = vmatpush3.xpose.msra.mxu1 %v1663_v54  ;;  %2479 = vmatprep.mubr.msk.f32.mxu1 %vm2687_vm1, %v2686_v1 }
 0x1bf   : > { %2445 = vmatmul.mubr.f32.vlgmr.msra.gmra.mrb[2].mxu0 %v1277_v41  ;;  %2482 = vmatprep.subr.mxu1 %v2686_v1 }
 0x1c0   : > { %2448 = vmatpush3.xpose.msra.mxu0 %v1211_v58  ;;  %2449 = vmatprep.mubr.msk.f32.mxu0 %vm2687_vm1, %v2686_v1 }
 0x1c1   : > { %2452 = vmatprep.subr.mxu0 %v2686_v1 }
 0x1c5   : > { %2480 = vmatmul.mubr.f32.vlgmr.msra.gmra.mrb[2].mxu1 %v1730_v42 }
 0x1c6   : > { %2483 = vmatpush3.xpose.msra.mxu1 %v1741_v60  ;;  %2484 = vmatprep.mubr.msk.f32.mxu1 %vm2687_vm1, %v2686_v1 }
 0x1c7   : > { %2450 = vmatmul.mubr.f32.vlgmr.msra.gmra.mrb[2].mxu0 %v1278_v48  ;;  %2487 = vmatprep.subr.mxu1 %v2686_v1 }
 0x1c8   : > { %2453 = vmatpush3.xpose.msra.mxu0 %v1289_v63  ;;  %2454 = vmatprep.mubr.msk.f32.mxu0 %vm2687_vm1, %v2686_v1 }
 0x1c9   : > { %2457 = vmatprep.subr.mxu0 %v2686_v1 }
 0x1cd   : > { %2485 = vmatmul.mubr.f32.vlgmr.msra.gmra.mrb[2].mxu1 %v2856_v36 }
 0x1ce   : > { %2488 = vmatpush3.xpose.msra.mxu1 %v1663_v54  ;;  %2489 = vmatprep.mubr.msk.f32.mxu1 %vm2687_vm1, %v2686_v1 }
 0x1cf   : > { %2455 = vmatmul.mubr.f32.vlgmr.msra.gmra.mrb[2].mxu0 %v2858_v37 }
 0x1d0   : > { %2458 = vmatpush3.xpose.msra.mxu0 %v1211_v58  ;;  %2459 = vmatprep.mubr.msk.f32.mxu0 %vm2687_vm1, %v2686_v1 }
 0x1d5   : > { %2490 = vmatmul.mubr.f32.vlgmr.msra.gmra.mrb[2].mxu1 %v2856_v36 }
 0x1d7   : > { %2460 = vmatmul.mubr.f32.vlgmr.msra.gmra.mrb[2].mxu0 %v2858_v37 }
 0x1d8   : > { %2602 = shalt.err (!%p2599_p3)
}
 0x1d9   : > { %s2603_s17 = scalar_lea.hbm %s2912_s10, 128  ;;  %s2607_s30 = scalar_lea.hbm %s2985_s4, 256 }
 0x1da   : > { %p2604_p4 = scmp.ne.s32.totalorder %s2912_s10, %s2603_s17  ;;  %p2608_p9 = scmp.lt.u32.totalorder %s2912_s10, %s2985_s4 }
 0x1db   : > { %p2609_p10 = scmp.lt.u32.totalorder %s2607_s30, %s2603_s17  ;;  %p2611_p12 = scmp.lt.u32.totalorder %s2603_s17, %s2912_s10 }
 0x1dc   : > { %p2605_p7 = pnand %p2604_p4, %p2758_p5 }
 0x1dd   : > { %p2610_p11 = por %p2609_p10, %p2608_p9 }
 0x1de   : > { %p2606_p8 = pneg %p2605_p7 }
 0x1df   : > { %p2612_p13 = por %p2611_p12, %p2610_p11 }
 0x1e1   : > { %p2613_p0 = pnand %p2612_p13, %p2606_p8 }
 0x1e3   : > { %2616 = shalt.err (!%p2613_p0)
}
 0x1e4   : > { %2533 = dma.vmem_to_hbm [thread:$0]  (%p2758_p5), %s2167_s11, 128, %s2912_s10, %s2149_s12   ;;  %v2114_v6 = vpop.xlane.xlu0 %2113  ;;  %v2120_v8 = vpop.xlane.xlu1 %2119  ;;  %vm2125_vm6 = vcmask 60416   ;;  %vm2146_vm7 = vcmask 57344  }
 0x1e5   : > { %v2122_v12 = vmul.f32 0.5, %v2120_v8  ;;  %s2321_s8 = sshll.u32 %s2741_s22, 4  ;;  %s264_s9 = scalar_lea.vmem [#allocation4], %s2862_s26 }
 0x1e6   : > { %s2179_s10 = sshll.u32 %s264_s9, 4  ;;  %s2938_s13 = scalar_lea.hbm %s2986_s5, %s2321_s8  ;;  %s2940_s10 = int_to_ptr.vmem [resolvable:$true] %s2179_s10 }
 0x1e7   : > { %s2154_s14 = scalar_lea.sflag [#allocation5], %s2862_s26  ;;  %s2617_s15 = scalar_lea.vmem %s2940_s10, 16 }
 0x1e8   : > { %p2618_p1 = scmp.ne.s32.totalorder %s2940_s10, %s2617_s15  ;;  %s2689_s22 = smov [#allocation4]  }
 0x1e9   : > { %s2621_s16 = sshll.u32 %s2689_s22, 4  ;;  %s2622_s16 = int_to_ptr.vmem [resolvable:$false] %s2621_s16 }
 0x1ea   : > { %p2619_p2 = pnand %p2618_p1, %p2758_p5  ;;  %s2623_s17 = scalar_lea.vmem %s2622_s16, 32 }
 0x1eb   : > { %p2624_p4 = scmp.lt.s32.totalorder %s2940_s10, %s2622_s16  ;;  %p2625_p7 = scmp.lt.s32.totalorder %s2623_s17, %s2617_s15 }
 0x1ec   : > { %p2620_p3 = pneg %p2619_p2 }
 0x1ed   : > { %p2626_p8 = por %p2625_p7, %p2624_p4 }
 0x1ef   : > { %p2627_p9 = pnand %p2626_p8, %p2620_p3 }
 0x2a8   : > { %v2104_v1 = vpop.f32.mrb[2].mxu1 }
 0x2a9   : > { %v2108_v4 = vmul.f32 2.0, %v2104_v1  ;;  %v2491_v5 = vpop.f32.mrb[3].mxu1 }
 0x2aa   : > { %v1652_v7 = vpop.f32.mrb[2].mxu0 }
 0x2ab   : > { %v2109_v9 = vsub.f32 %v1652_v7, %v2108_v4  ;;  %v2461_v10 = vpop.f32.mrb[3].mxu0 }
 0x2ad   : > { %v2115_v11 = vadd.f32 %v2114_v6, %v2109_v9 }
 0x2af   : > { %v2121_v13 = vmul.f32 -0.5, %v2115_v11 }
 0x2b1   : > { %v2123_v14 = vadd.f32 %v2122_v12, %v2121_v13 }
 0x2b3   : > { %v2318_v15 = vadd.f32 -30.792328, %v2123_v14 }
 0x2b5   : > { %v2126_v16 = vsel %vm2125_vm6, %v2318_v15, -inf }
 0x2b6   : > { %v2127_v17 = vrot.slane %v2126_v16, 4 }
 0x2b8   : > { %v2128_v18 = vmax.f32 %v2126_v16, %v2127_v17 }
 0x2ba   : > { %v2129_v19 = vrot.slane %v2128_v18, 2 }
 0x2bc   : > { %v2130_v20 = vmax.f32 %v2128_v18, %v2129_v19 }
 0x2be   : > { %v2131_v21 = vrot.slane %v2130_v20, 1 }
 0x2c0   : > { %v2132_v22 = vmax.f32 %v2130_v20, %v2131_v21 }
 0x2c2   : > { %v2133_v23 = vsub.f32 %v2318_v15, %v2132_v22 }
 0x2c4   : > { %v2134_v24 = vmul.f32 1.442695, %v2133_v23 }
 0x2c6   : > { %2585 = vpow2.f32 %v2134_v24 }
 0x2d0   : > { %v2586_v25 = vpop.eup %2585 }
 0x2d1   : > { %v2136_v26 = vsel %vm2125_vm6, %v2586_v25, 0.0 }
 0x2d2   : > { %v2137_v27 = vrot.slane %v2136_v26, 4 }
 0x2d4   : > { %v2138_v28 = vadd.f32 %v2137_v27, %v2136_v26 }
 0x2d6   : > { %v2139_v29 = vrot.slane %v2138_v28, 2 }
 0x2d8   : > { %v2140_v30 = vadd.f32 %v2139_v29, %v2138_v28 }
 0x2da   : > { %v2141_v31 = vrot.slane %v2140_v30, 1 }
 0x2dc   : > { %v2142_v32 = vadd.f32 %v2141_v31, %v2140_v30 }
 0x2de   : > { %2587 = vlog2.f32 %v2142_v32 }
 0x2e8   : > { %v2588_v33 = vpop.eup %2587 }
 0x2e9   : > { %v2144_v34 = vmul.f32 0.6931472, %v2588_v33 }
 0x2eb   : > { %v2145_v35 = vadd.f32 %v2144_v34, %v2132_v22 }
 0x2ed   : > { %2147 = vst.msk [vmem:[%s264_s9] sm:$0x1] %vm2146_vm7, %v2145_v35 }
 0x2ee   : > { %2630 = shalt.err (!%p2627_p9)
}
 0x2ef   : > { %s2631_s26 = scalar_lea.hbm %s2938_s13, 16  ;;  %s2635_s30 = scalar_lea.hbm %s2986_s5, 32 }
 0x2f0   : > { %p2632_p10 = scmp.ne.s32.totalorder %s2938_s13, %s2631_s26  ;;  %p2636_p13 = scmp.lt.u32.totalorder %s2938_s13, %s2986_s5 }
 0x2f1   : > { %p2637_p0 = scmp.lt.u32.totalorder %s2635_s30, %s2631_s26  ;;  %p2639_p2 = scmp.lt.u32.totalorder %s2631_s26, %s2938_s13 }
 0x2f2   : > { %p2633_p11 = pnand %p2632_p10, %p2758_p5 }
 0x2f3   : > { %p2638_p1 = por %p2637_p0, %p2636_p13 }
 0x2f4   : > { %p2634_p12 = pneg %p2633_p11 }
 0x2f5   : > { %p2640_p3 = por %p2639_p2, %p2638_p1 }
 0x2f7   : > { %p2641_p4 = pnand %p2640_p3, %p2634_p12 }
 0x2f9   : > { %2644 = shalt.err (!%p2641_p4)
}
 0x2fa   : > { %2534 = dma.vmem_to_hbm [thread:$0]  (%p2758_p5), %s2940_s10, 16, %s2938_s13, %s2154_s14  }
 0x2fb PF: > { %p2544_p7 = scmp.ge.s32.totalorder %s2683_s21, 2  ;;  %s2191_s8 = sand.u32 1, %s2671_s18  }
 0x2fc   : > { %s2192_s9 = scalar_lea.sflag [#allocation3], %s2191_s8 }
 0x2fd   : > { %p2538_p8 = pnand %p2544_p7, %p2762_p6 }
 0x2ff   : > { %2662 = dma.done.wait (!%p2538_p8), %s2192_s9, 128  }
 0x300   : > { %2664 = vsyncadd (!%p2538_p8), %s2192_s9, 4294967168  ;;  %s2201_s11 = scalar_lea.sflag [#allocation5], %s2191_s8 }
 0x301   : > { %2666 = dma.done.wait (!%p2538_p8), %s2201_s11, 16  }
 0x302   : > { %2668 = vsyncadd (!%p2538_p8), %s2201_s11, 4294967280  ;;  %p19_p5 = scmp.ge.s32.totalorder %s2745_s24, 4   ;;  %s2989_s18 = smov %s2675_s19 }
 0x303   : > { %s2990_s19 = smov %s2679_s20  ;;  %s2991_s20 = smov %s2756_s27 }
 0x304   : > { %s2992_s21 = smov %s2745_s24  ;;  %21 = sbr.rel (!%p19_p5) target bundleno = 5 (0x5), region = 97 }
 0x30b   :  { %2205 = vsyncpa [#allocation3], 1 }
 0x30c   :  { %2207 = vsyncpa [#allocation3 + $0x1], 1 }
 0x30d   :  { %2208 = vsyncpa [#allocation5], 1 }
 0x30e   :  { %2210 = vsyncpa [#allocation5 + $0x1], 1 }

</bundles_post_ra>
